<compile_context>
chip_gen: v7x
topology: tpu7x:2x2x1
jax: 0.10.0
libtpu: 0.0.40
codegen_flags: <defaults>
</compile_context>

<pallas_src>
import jax
import jax.numpy as jnp
from jax.experimental import pallas as pl
from jax.experimental.pallas import tpu as pltpu


def _make_kernel(b_axis: int):
    """b_axis = which grid axis carries the elite/batch index."""

    def kernel(elites_ref, x_ref, w_ref, bias_ref, o_ref):
        # x_ref: (1, TN, I)  w_ref: (1, I, Op)  bias_ref: (E, 1, Op)  o_ref: (1, TN, Op)
        e = elites_ref[pl.program_id(b_axis)]                 # SMEM scalar gather index
        y = jnp.dot(x_ref[0], w_ref[0],
                    preferred_element_type=jnp.float32)       # MXU, f32 accumulation
        o_ref[0] = (y + bias_ref[e]).astype(o_ref.dtype)      # broadcast (1, Op) bias

    return kernel


def ensemble_linear(x, weight, bias, elites, *, block_n=512, compute_dtype=None):
    """Pallas implementation of EnsembleLinear.forward.

    x:      (N, I) or (B, N, I)
    weight: (E, I, O)
    bias:   (E, 1, O)
    elites: (B,) integer indices into the ensemble dimension
    returns (B, N, O) in x.dtype
    """
    elites = elites.astype(jnp.int32)
    B = int(elites.shape[0])
    E, I, O = weight.shape
    out_dtype = x.dtype

    # ---- lane-dense output: pad O up to a multiple of 128 (sliced off at the end)
    O_pad = -(-O // 128) * 128
    if O_pad != O:
        weight = jnp.pad(weight, ((0, 0), (0, 0), (0, O_pad - O)))
        bias = jnp.pad(bias, ((0, 0), (0, 0), (0, O_pad - O)))
    bias = bias.astype(jnp.float32)

    # ---- optional bf16 compute path (halves HBM bytes; accumulation stays f32)
    if compute_dtype is not None:
        x = x.astype(compute_dtype)
        weight = weight.astype(compute_dtype)

    if x.ndim == 2:
        N = x.shape[0]
    else:
        assert x.shape[0] == B, "3-D input: leading dim must equal number of elites"
        N = x.shape[1]

    # ---- N tiling: tile must be a multiple of 8 sublanes, or the full dim
    if N <= block_n:
        tn = int(N)
    else:
        tn = int(block_n)
        assert tn % 8 == 0, "block_n must be a multiple of 8"
    n_t = pl.cdiv(N, tn)

    x_isz = jnp.dtype(x.dtype).itemsize
    w_isz = jnp.dtype(weight.dtype).itemsize
    o_isz = jnp.dtype(out_dtype).itemsize

    if x.ndim == 2:
        # shared x: B innermost => x tile resident across all elites
        x_in = x[None]                                   # (1, N, I)
        grid = (n_t, B)
        b_axis = 1
        x_map = lambda nt, b, el: (0, nt, 0)
        w_map = lambda nt, b, el: (el[b], 0, 0)
        bias_map = lambda nt, b, el: (0, 0, 0)
        o_map = lambda nt, b, el: (b, nt, 0)
    else:
        # per-elite x: Nt innermost => gathered weight resident across N tiles
        x_in = x                                          # (B, N, I)
        grid = (B, n_t)
        b_axis = 0
        x_map = lambda b, nt, el: (b, nt, 0)
        w_map = lambda b, nt, el: (el[b], 0, 0)
        bias_map = lambda b, nt, el: (0, 0, 0)
        o_map = lambda b, nt, el: (b, nt, 0)

    # ---- explicit VMEM budget (double-buffered x / w / out blocks + resident bias)
    vmem_bytes = 2 * (tn * I * x_isz + I * O_pad * w_isz + tn * O_pad * o_isz)
    vmem_bytes += 2 * E * O_pad * 4
    vmem_limit = int(min(max(vmem_bytes + (4 << 20), 16 << 20), 64 << 20))

    grid_spec = pltpu.PrefetchScalarGridSpec(
        num_scalar_prefetch=1,
        grid=grid,
        in_specs=[
            pl.BlockSpec((1, tn, I), x_map),
            pl.BlockSpec((1, I, O_pad), w_map),
            pl.BlockSpec((E, 1, O_pad), bias_map),   # fully resident, DMA'd once
        ],
        out_specs=pl.BlockSpec((1, tn, O_pad), o_map),
    )

    out = pl.pallas_call(
        _make_kernel(b_axis),
        out_shape=jax.ShapeDtypeStruct((B, N, O_pad), out_dtype),
        grid_spec=grid_spec,
        compiler_params=pltpu.CompilerParams(
            dimension_semantics=("parallel", "parallel"),
            vmem_limit_bytes=vmem_limit,
        ),
    )(elites, x_in, weight, bias)

    if O_pad != O:
        out = out[..., :O]
    return out


def init_ensemble_linear_params(key, input_dim, output_dim, num_ensemble):
    """trunc_normal(std=1/(2*sqrt(in))) weight, zero bias (matches module init)."""
    std = 1.0 / (2.0 * input_dim ** 0.5)
    w = jax.random.truncated_normal(
        key, -2.0, 2.0, (num_ensemble, input_dim, output_dim), jnp.float32) * std
    b = jnp.zeros((num_ensemble, 1, output_dim), jnp.float32)
    return w, b


if __name__ == "__main__":
    key = jax.random.PRNGKey(0)
    k_w, k_b, k_x2, k_x3, k_w2, k_b2, k_x4 = jax.random.split(key, 7)

    HIGH = jax.lax.Precision.HIGHEST

    # ------------------------------------------------------------------
    # Test 1: 2-D shared-x path ('ij,bjk->bik'), lane-aligned dims
    # ------------------------------------------------------------------
    E, I, O, N = 7, 128, 128, 256
    weight, bias = init_ensemble_linear_params(k_w, I, O, E)
    bias = 0.1 * jax.random.normal(k_b, (E, 1, O), jnp.float32)  # non-zero to test the add
    elites = jnp.arange(E, dtype=jnp.int32)                       # load_model=False path
    x2 = jax.random.normal(k_x2, (N, I), jnp.float32)

    out2 = jax.block_until_ready(ensemble_linear(x2, weight, bias, elites))
    ref2 = jnp.einsum('ij,bjk->bik', x2, weight[elites], precision=HIGH) + bias[elites]
    assert out2.shape == (E, N, O)
    assert jnp.allclose(out2, ref2, atol=1e-3, rtol=1e-3), float(jnp.max(jnp.abs(out2 - ref2)))

    # ------------------------------------------------------------------
    # Test 2: 3-D per-elite-x path ('bij,bjk->bik') with an elite subset
    # ------------------------------------------------------------------
    elites_sub = jnp.array([6, 2, 0, 4, 1], dtype=jnp.int32)      # after set_elites
    x3 = jax.random.normal(k_x3, (elites_sub.shape[0], N, I), jnp.float32)

    out3 = jax.block_until_ready(ensemble_linear(x3, weight, bias, elites_sub))
    ref3 = jnp.einsum('bij,bjk->bik', x3, weight[elites_sub], precision=HIGH) + bias[elites_sub]
    assert out3.shape == (elites_sub.shape[0], N, O)
    assert jnp.allclose(out3, ref3, atol=1e-3, rtol=1e-3), float(jnp.max(jnp.abs(out3 - ref3)))

    # ------------------------------------------------------------------
    # Test 3: small non-lane-aligned O exercises the pad/slice path
    # ------------------------------------------------------------------
    E3, I3, O3, N3 = 4, 64, 48, 40
    w3, _ = init_ensemble_linear_params(k_w2, I3, O3, E3)
    b3 = 0.1 * jax.random.normal(k_b2, (E3, 1, O3), jnp.float32)
    el3 = jnp.array([3, 1, 2], dtype=jnp.int32)
    x4 = jax.random.normal(k_x4, (N3, I3), jnp.float32)

    out4 = jax.block_until_ready(ensemble_linear(x4, w3, b3, el3))
    ref4 = jnp.einsum('ij,bjk->bik', x4, w3[el3], precision=HIGH) + b3[el3]
    assert out4.shape == (el3.shape[0], N3, O3)
    assert jnp.allclose(out4, ref4, atol=1e-3, rtol=1e-3), float(jnp.max(jnp.abs(out4 - ref4)))

    print("KERNEL_OK")
</pallas_src>

<mosaic_0001>
module attributes {stable_mosaic.version = 11 : i64} {
  func.func @kernel(%arg0: i32, %arg1: i32, %arg2: memref<7xi32, #tpu.memory_space<smem>>, %arg3: memref<1x256x128xf32, #tpu.memory_space<vmem>>, %arg4: memref<1x128x128xf32, #tpu.memory_space<vmem>>, %arg5: memref<7x1x128xf32, #tpu.memory_space<vmem>>, %arg6: memref<1x256x128xf32, #tpu.memory_space<vmem>>) attributes {dimension_semantics = [#tpu.dimension_semantics<parallel>, #tpu.dimension_semantics<parallel>], iteration_bounds = array<i64: 1, 7>, scalar_prefetch = 1 : i64, scratch_operands = 0 : i64, tpu.core_type = #tpu.core_type<tc>, window_params = [{transform_indices = @transform_0, window_bounds = array<i64: 1, 256, 128>}, {transform_indices = @transform_1, window_bounds = array<i64: 1, 128, 128>}, {pipeline_mode = #tpu.pipeline_mode<synchronous>, transform_indices = @transform_2, window_bounds = array<i64: 7, 1, 128>}, {transform_indices = @transform_3, window_bounds = array<i64: 1, 256, 128>}]} {
    %0 = arith.index_cast %arg1 : i32 to index
    %1 = memref.load %arg2[%0] : memref<7xi32, #tpu.memory_space<smem>>
    %c0 = arith.constant 0 : index
    %c0_0 = arith.constant 0 : index
    %c0_1 = arith.constant 0 : index
    %2 = vector.load %arg3[%c0, %c0_0, %c0_1] : memref<1x256x128xf32, #tpu.memory_space<vmem>>, vector<1x256x128xf32>
    %3 = vector.shape_cast %2 : vector<1x256x128xf32> to vector<256x128xf32>
    %c0_2 = arith.constant 0 : index
    %c0_3 = arith.constant 0 : index
    %c0_4 = arith.constant 0 : index
    %4 = vector.load %arg4[%c0_2, %c0_3, %c0_4] : memref<1x128x128xf32, #tpu.memory_space<vmem>>, vector<1x128x128xf32>
    %5 = vector.shape_cast %4 : vector<1x128x128xf32> to vector<128x128xf32>
    %cst = arith.constant dense<0.000000e+00> : vector<256x128xf32>
    %6 = tpu.matmul %3, %5, %cst {dimension_numbers = #tpu.dot_dimension_numbers<[1], [0], [0], [1], [0, 0, 1, 1], [], []>} : vector<256x128xf32>, vector<128x128xf32>, vector<256x128xf32> -> vector<256x128xf32>
    %7 = arith.index_cast %1 : i32 to index
    %c0_5 = arith.constant 0 : index
    %c0_6 = arith.constant 0 : index
    %8 = vector.load %arg5[%7, %c0_5, %c0_6] : memref<7x1x128xf32, #tpu.memory_space<vmem>>, vector<1x1x128xf32>
    %9 = vector.shape_cast %8 : vector<1x1x128xf32> to vector<1x128xf32>
    %10 = vector.broadcast %9 : vector<1x128xf32> to vector<256x128xf32>
    %11 = arith.addf %6, %10 : vector<256x128xf32>
    %c0_7 = arith.constant 0 : index
    %c0_8 = arith.constant 0 : index
    %c0_9 = arith.constant 0 : index
    %12 = vector.load %arg6[%c0_7, %c0_8, %c0_9] : memref<1x256x128xf32, #tpu.memory_space<vmem>>, vector<1x256x128xf32>
    %13 = vector.shape_cast %12 : vector<1x256x128xf32> to vector<256x128xf32>
    %14 = vector.shape_cast %11 : vector<256x128xf32> to vector<1x256x128xf32>
    tpu.vector_store %arg6[%c0_7, %c0_8, %c0_9], %14 {strides = array<i32>} : memref<1x256x128xf32, #tpu.memory_space<vmem>>, vector<1x256x128xf32>,
    return
  }
  func.func @transform_0(%arg0: i32, %arg1: i32, %arg2: memref<7xi32, #tpu.memory_space<smem>>) -> (i32, i32, i32) {
    %c0_i32 = arith.constant 0 : i32
    %c0_i32_0 = arith.constant 0 : i32
    %c0_i32_1 = arith.constant 0 : i32
    return %c0_i32, %arg0, %c0_i32_0 : i32, i32, i32
  }
  func.func @transform_1(%arg0: i32, %arg1: i32, %arg2: memref<7xi32, #tpu.memory_space<smem>>) -> (i32, i32, i32) {
    %0 = arith.index_cast %arg1 : i32 to index
    %1 = memref.load %arg2[%0] : memref<7xi32, #tpu.memory_space<smem>>
    %c0_i32 = arith.constant 0 : i32
    %c0_i32_0 = arith.constant 0 : i32
    %c0_i32_1 = arith.constant 0 : i32
    return %1, %c0_i32, %c0_i32_0 : i32, i32, i32
  }
  func.func @transform_2(%arg0: i32, %arg1: i32, %arg2: memref<7xi32, #tpu.memory_space<smem>>) -> (i32, i32, i32) {
    %c0_i32 = arith.constant 0 : i32
    %c0_i32_0 = arith.constant 0 : i32
    %c0_i32_1 = arith.constant 0 : i32
    %c0_i32_2 = arith.constant 0 : i32
    return %c0_i32, %c0_i32_0, %c0_i32_1 : i32, i32, i32
  }
  func.func @transform_3(%arg0: i32, %arg1: i32, %arg2: memref<7xi32, #tpu.memory_space<smem>>) -> (i32, i32, i32) {
    %c0_i32 = arith.constant 0 : i32
    %c0_i32_0 = arith.constant 0 : i32
    return %arg1, %arg0, %c0_i32 : i32, i32, i32
  }
}

</mosaic_0001>

<bundles_post_ra>
// kernel: tpu_custom_call.1
= control target key start
LH: loop header
LB: loop body
LE: loop exit
PB: predicated region body
PF: predicated region fallthrough
CT: control target
= control target key end

     0   :  { %s1529_s0 = inlined_call_operand.hbm [shape: s32[7], index: 0, kind: input, shape index: {}]   ;;  %s1530_s1 = inlined_call_operand.hbm [shape: f32[1,256,128], index: 1, kind: input, shape index: {}]   ;;  %s1531_s2 = inlined_call_operand.hbm [shape: f32[7,128,128], index: 2, kind: input, shape index: {}]   ;;  %s1532_s3 = inlined_call_operand.vmem [shape: f32[7,1,128], index: 3, kind: input, shape index: {}]   ;;  %s1533_s4 = inlined_call_operand.hbm [shape: f32[7,256,128], index: 4, kind: output, shape index: {}]  }
   0x1   :  { %1543 = sst [smem:[#allocation18_spill]] %s1530_s1  ;;  %s968_s17 = scalar_lea.hbm %s1529_s0, 16 }
   0x2   :  { %p969_p0 = scmp.ne.s32.totalorder %s1529_s0, %s968_s17  ;;  %p972_p1 = scmp.lt.u32.totalorder %s968_s17, %s1529_s0 }
   0x4   :  { %p974_p2 = pnand %p972_p1, %p969_p0 }
   0x6   :  { %977 = shalt.err (!%p974_p2)  }
   0x7   :  { %s1150_s22 = smov [#allocation3]  }
   0x8   :  { %10 = dma.hbm_to_smem %s1529_s0, 16, %s1150_s22, [#allocation2] }
   0x9   :  { %1100 = dma.done.wait [#allocation2], 16 }
   0xa   :  { %1101 = vsyncadd [#allocation2], 4294967280 }
   0xb   :  { %12 = sfence }
   0xc   :  { %13 = vsyncpa [#allocation5], 0 }
   0xd   :  { %14 = vsyncpa [#allocation8], 0 }
   0xe   :  { %16 = vsyncpa [#allocation8 + $0x1], 0 }
   0xf   :  { %17 = vsyncpa [#allocation6], 0 }
  0x10   :  { %19 = vsyncpa [#allocation6 + $0x1], 0  ;;  %s1195_s25 = smov 0   ;;  %s1197_s26 = smov 0  }
  0x11   :  { %s1199_s27 = smov 0   ;;  %s1201_s28 = smov 0  }
  0x12   :  { %s1203_s29 = smov 0   ;;  %s1205_s30 = smov 0  }
  0x13   :  { %s1207_s0 = smov 0   ;;  %s1209_s5 = smov 0  }
  0x14   :  { %s1211_s6 = smov 0  }
  0x15 LB: > { %1544 = sst [smem:[#allocation16_spill]] %s1144_s5  ;;  %s666_s7 = sadd.s32 4294967295, %s1148_s6   ;;  %s1148_s6 = sphi %s1211_s6, %s25_s6   ;;  %s1144_s5 = sphi %s1209_s5, %s1562_s5   ;;  %s1140_s0 = sphi %s1207_s0, %s1561_s0   ;;  %s1136_s30 = sphi %s1205_s30, %s1568_s30   ;;  %s1132_s29 = sphi %s1203_s29, %s1567_s29   ;;  %s1128_s28 = sphi %s1201_s28, %s1566_s28   ;;  %s1124_s27 = sphi %s1199_s27, %s1565_s27   ;;  %s1120_s26 = sphi %s1197_s26, %s1564_s26   ;;  %s1116_s25 = sphi %s1195_s25, %s1563_s25  }
  0x16   : > { %s667_s8 = sadd.s32 4294967294, %s1148_s6   ;;  %p85_p3 = scmp.ne.s32.totalorder %s1132_s29, %s1128_s28 }
  0x17   : > { %p1241_p4 = scmp.eq.s32.totalorder %s666_s7, 0  ;;  %p131_p5 = scmp.ne.s32.totalorder %s1124_s27, %s1120_s26 }
  0x18   : > { %p132_p7 = scmp.eq.s32.totalorder %s666_s7, 6  ;;  %p137_p8 = scmp.ne.s32.totalorder %s1120_s26, %s1116_s25 }
  0x19   : > { %s1545_s9 = scalar_select %p1241_p4, 1, 0 }
  0x1a   : > { %p1249_p6 = por %p1241_p4, %p85_p3  ;;  %p138_p9 = scmp.eq.s32.totalorder %s667_s8, 6 }
  0x1b   : > { %p1255_p10 = por %p132_p7, %p131_p5  ;;  %p668_p11 = scmp.ge.s32.totalorder %s1148_s6, 1 }
  0x1c   : > { %s1546_s10 = scalar_select %p1249_p6, 1, 0 }
  0x1d   : > { %s1547_s11 = scalar_select %p1255_p10, 1, 0 }
  0x1e   : > { %p1260_p12 = por %p138_p9, %p137_p8  ;;  %p145_p13 = scmp.lt.s32.totalorder %s1148_s6, 8 }
  0x1f   : > { %s1151_s14 = smov [#allocation4]   ;;  %s34_s17 = sadd.s32 1, %s1144_s5 }
  0x20   : > { %s1548_s12 = scalar_select %p1260_p12, 1, 0 }
  0x21   : > { %p1265_p0 = pnand %p668_p11, %p145_p13  ;;  %s160_s15 = sshll.u32 %s1151_s14, 4  ;;  %s161_s15 = int_to_ptr.vmem [resolvable:$true] %s160_s15 }
  0x22   : > { %s1551_s1 = sld [smem:[#allocation18_spill]] }
  0x23   : > { %s1549_s13 = scalar_select %p1265_p0, 1, 0 }
  0x24   : > { %p872_p1 = pneg %p1265_p0 }
  0x26   : > { %p1273_p2 = pnand %p872_p1, %p1241_p4 }
  0x28   : > { %s978_s20 = scalar_lea.hbm %s1551_s1, 4096  ;;  %p980_p5 = pneg %p1273_p2 }
  0x29   : > { %p979_p3 = scmp.ne.s32.totalorder %s1551_s1, %s978_s20  ;;  %p985_p9 = scmp.lt.u32.totalorder %s978_s20, %s1551_s1 }
  0x2b   : > { %p981_p7 = pnand %p980_p5, %p979_p3 }
  0x2d   : > { %p982_p8 = pneg %p981_p7 }
  0x2f   : > { %p987_p11 = pnand %p985_p9, %p982_p8 }
  0x31   : > { %990 = shalt.err (!%p987_p11)
}
  0x32   : > { %s991_s28 = scalar_lea.vmem %s161_s15, 4096  ;;  %p999_p10 = scmp.lt.s32.totalorder %s161_s15, %s161_s15 }
  0x33   : > { %p992_p13 = scmp.ne.s32.totalorder %s161_s15, %s991_s28  ;;  %p1000_p6 = scmp.lt.s32.totalorder %s991_s28, %s991_s28 }
  0x35   : > { %p994_p1 = pnand %p992_p13, %p980_p5  ;;  %p1001_p4 = por %p1000_p6, %p999_p10 }
  0x37   : > { %p995_p12 = pneg %p994_p1 }
  0x39   : > { %p1002_p0 = pnand %p1001_p4, %p995_p12 }
  0x3b   : > { %1005 = shalt.err (!%p1002_p0)
}
  0x3c   : > { %s1539_s7 = smov 128   ;;  %s1540_s8 = smov 8  }
  0x3d   : > { %875 = dma.hbm_to_vmem [thread:$0]  (!%p1273_p2), %s1551_s1, 4096, %s161_s15, [#allocation5], %s1539_s7, %s1539_s7, %s1540_s8  }
  0x3e   : > { %p35_p4 = scmp.ge.s32.totalorder %s34_s17, 7  ;;  %s121_s19 = sadd.s32 1, %s1124_s27 }
  0x3f   : > { %s67_s20 = sld [smem:[#allocation3 + %s1144_s5]]  ;;  %p79_p6 = scmp.ne.s32.totalorder %s1136_s30, %s1132_s29 }
  0x40   : > { %s1570_s17 = smov (%p35_p4, %s34_s17), 0  ;;  %p80_p10 = scmp.eq.s32.totalorder %s1148_s6, 0 }
  0x41   : > { %1552 = sst [smem:[#allocation17_spill]] %s1570_s17  ;;  %s116_s16 = ssub.s32 %s1144_s5, %s1570_s17 }
  0x42   : > { %s68_s21 = sld [smem:[#allocation3 + %s1570_s17]]  ;;  %p119_p12 = scmp.eq.s32.totalorder %s116_s16, 0 }
  0x43   : > { %s177_s22 = sand.u32 1, %s1136_s30   ;;  %p81_p0 = por %p80_p10, %p79_p6 }
  0x44   : > { %s1309_s23 = scalar_select %p119_p12, %s1124_s27, %s121_s19  }
  0x45   : > { %s72_s24 = sadd.s32 1, %s1136_s30  ;;  %p887_p2 = scmp.lt.s32.totalorder %s1148_s6, 7 }
  0x46   : > { %s671_s28 = sshll.u32 %s177_s22, 7 }
  0x47   : > { %p1313_p5 = pnand %p887_p2, %p81_p0  ;;  %s181_s16 = scalar_lea.vmem [#allocation7], %s671_s28 }
  0x48   : > { %s69_s15 = ssub.s32 %s67_s20, %s68_s21  ;;  %s189_s1 = sshll.u32 %s181_s16, 4  ;;  %s1321_s1 = int_to_ptr.vmem [resolvable:$true] %s189_s1 }
  0x49   : > { %p70_p3 = scmp.eq.s32.totalorder %s69_s15, 0  ;;  %p1008_p8 = pneg %p1313_p5 }
  0x4a   : > { %s864_s18 = scalar_select %p81_p0, [#allocation3], [#allocation10] }
  0x4b   : > { %s1318_s7 = scalar_select %p70_p3, %s1136_s30, %s72_s24  }
  0x4c   : > { %s865_s8 = scalar_select %p81_p0, %s1144_s5, 0 }
  0x4d   : > { %s1572_s18 = smov (!%p887_p2, %s864_s18), [#allocation11]  ;;  %s1328_s24 = scalar_lea.sflag [#allocation8], %s177_s22 }
  0x4e   : > { %s1574_s8 = smov (!%p887_p2, %s865_s8), 0 }
  0x4f   : > { %s182_s19 = sld [smem:[%s1572_s18 + %s1574_s8]]  ;;  %s1011_s18 = scalar_lea.hbm %s1531_s2, 14336 }
  0x55   : > { %s684_s20 = sshll.u32 %s182_s19, 11 }
  0x56   : > { %s1326_s17 = scalar_lea.hbm %s1531_s2, %s684_s20 }
  0x57   : > { %s1006_s5 = scalar_lea.hbm %s1326_s17, 2048  ;;  %p1012_p13 = scmp.lt.u32.totalorder %s1326_s17, %s1531_s2 }
  0x58   : > { %p1007_p7 = scmp.ne.s32.totalorder %s1326_s17, %s1006_s5  ;;  %p1013_p1 = scmp.lt.u32.totalorder %s1011_s18, %s1006_s5 }
  0x59   : > { %p1015_p6 = scmp.lt.u32.totalorder %s1006_s5, %s1326_s17 }
  0x5a   : > { %p1009_p9 = pnand %p1008_p8, %p1007_p7  ;;  %p1014_p4 = por %p1013_p1, %p1012_p13 }
  0x5c   : > { %p1010_p11 = pneg %p1009_p9  ;;  %p1016_p10 = por %p1015_p6, %p1014_p4 }
  0x5e   : > { %p1017_p12 = pnand %p1016_p10, %p1010_p11 }
  0x60   : > { %1020 = shalt.err (!%p1017_p12)
}
  0x61   : > { %s1021_s22 = scalar_lea.vmem %s1321_s1, 2048  ;;  %s1154_s20 = smov [#allocation7]  }
  0x62   : > { %p1022_p0 = scmp.ne.s32.totalorder %s1321_s1, %s1021_s22  ;;  %s1026_s21 = sshll.u32 %s1154_s20, 4  ;;  %s1027_s21 = int_to_ptr.vmem [resolvable:$false] %s1026_s21 }
  0x63   : > { %s1028_s15 = scalar_lea.vmem %s1027_s21, 4096  ;;  %p1029_p7 = scmp.lt.s32.totalorder %s1321_s1, %s1027_s21 }
  0x64   : > { %p1024_p2 = pnand %p1022_p0, %p1008_p8  ;;  %p1030_p9 = scmp.lt.s32.totalorder %s1028_s15, %s1021_s22 }
  0x66   : > { %p1025_p3 = pneg %p1024_p2  ;;  %p1031_p13 = por %p1030_p9, %p1029_p7 }
  0x68   : > { %p1032_p1 = pnand %p1031_p13, %p1025_p3 }
  0x6a   : > { %1035 = shalt.err (!%p1032_p1)
}
  0x6b   : > { %s1554_s5 = smov 8   ;;  %s1555_s8 = smov 128  }
  0x6c   : > { %881 = dma.hbm_to_vmem [thread:$0]  (!%p1313_p5), %s1326_s17, 2048, %s1321_s1, %s1328_s24, %s1555_s8, %s1555_s8, %s1554_s5  }
  0x6d   : > { %p1556_p8 = scmp.ne.s32.totalorder %s1549_s13, 0 }
  0x6e   : > { %p1557_p11 = scmp.ne.s32.totalorder (!%p1556_p8), %s1545_s9, 0 }
  0x6f   : > { %201 = sbr.rel (%p1556_p8) target bundleno = 416 (0x1a0), region = 32 }
  0x76   : > { %1103 = dma.done.wait (%p1557_p11), [#allocation5], 4096  }
  0x77   : > { %1105 = vsyncadd (%p1557_p11), [#allocation5], 4294963200  ;;  %s207_s28 = sand.u32 1, %s1132_s29   ;;  %p1558_p4 = scmp.ne.s32.totalorder %s1546_s10, 0 }
  0x78   : > { %s676_s14 = sshll.u32 %s207_s28, 7  ;;  %s208_s18 = scalar_lea.sflag [#allocation8], %s207_s28 }
  0x79   : > { %s1366_s19 = scalar_lea.vmem [#allocation7], %s676_s14 }
  0x7a   : > { %1107 = dma.done.wait (%p1558_p4), %s208_s18, 2048  }
  0x7b   : > { %1109 = vsyncadd (%p1558_p4), %s208_s18, 4294965248  ;;  %v270_v0 = vld [vmem:[%s1366_s19] sm:$0xff]  ;;  %v271_v1 = vld [vmem:[%s1366_s19 + $0x8] sm:$0xff]  ;;  %s237_s1 = sld [smem:[#allocation3 + %s1140_s0]]  ;;  %s231_s9 = sand.u32 1, %s1120_s26  }
  0x7c   : > { %v272_v2 = vld [vmem:[%s1366_s19 + $0x10] sm:$0xff]  ;;  %v814_v3 = vpack.c.bf16 %v271_v1, %v270_v0  ;;  %v273_v4 = vld [vmem:[%s1366_s19 + $0x18] sm:$0xff]  ;;  %v274_v6 = vld [vmem:[%s1366_s19 + $0x20] sm:$0xff]  ;;  %s677_s24 = sshll.u32 %s231_s9, 8  ;;  %s685_s22 = sshll.u32 %s1140_s0, 12 }
  0x7d   : > { %v818_v5 = vpack.c.bf16 %v273_v4, %v272_v2  ;;  %v275_v7 = vld [vmem:[%s1366_s19 + $0x28] sm:$0xff]  ;;  %v238_v9 = vld [vmem:[#allocation4] sm:$0xff]  ;;  %v276_v11 = vld [vmem:[%s1366_s19 + $0x30] sm:$0xff]  ;;  %s1401_s16 = scalar_lea.vmem [#allocation9], %s677_s24  ;;  %s1462_s15 = scalar_lea.hbm %s1533_s4, %s685_s22 }
  0x7e   : > { %815 = vmatprep.subr.bf16.mxu0 %v814_v3  ;;  %846 = vmatprep.subr.bf16.mxu1 %v814_v3  ;;  %v822_v8 = vpack.c.bf16 %v275_v7, %v274_v6  ;;  %v254_v10 = vld [vmem:[#allocation4 + $0x80] sm:$0xff]  ;;  %v277_v12 = vld [vmem:[%s1366_s19 + $0x38] sm:$0xff]  ;;  %v279_v15 = vld [vmem:[%s1366_s19 + $0x48] sm:$0xff]  ;;  %s567_s20 = sshll.u32 %s1401_s16, 4  ;;  %s1474_s5 = scalar_lea.sflag [#allocation6], %s231_s9  ;;  %s1464_s20 = int_to_ptr.vmem [resolvable:$true] %s567_s20 }
  0x7f   : > { %817 = vmatpush3.bf16.msra.mxu0 %v814_v3  ;;  %854 = vmatpush3.bf16.msra.mxu1 %v814_v3  ;;  %v826_v13 = vpack.c.bf16 %v277_v12, %v276_v11  ;;  %v278_v14 = vld [vmem:[%s1366_s19 + $0x40] sm:$0xff]  ;;  %v280_v17 = vld [vmem:[%s1366_s19 + $0x50] sm:$0xff]  ;;  %v281_v18 = vld [vmem:[%s1366_s19 + $0x58] sm:$0xff]  ;;  %s1036_s8 = scalar_lea.vmem %s1464_s20, 4096  ;;  %p1559_p6 = scmp.ne.s32.totalorder %s1547_s11, 0 }
  0x80   : > { %819 = vmatprep.subr.bf16.mxu0 %v818_v5  ;;  %847 = vmatprep.subr.bf16.mxu1 %v818_v5  ;;  %v830_v16 = vpack.c.bf16 %v279_v15, %v278_v14  ;;  %v834_v19 = vpack.c.bf16 %v281_v18, %v280_v17  ;;  %v282_v20 = vld [vmem:[%s1366_s19 + $0x60] sm:$0xff]  ;;  %v283_v21 = vld [vmem:[%s1366_s19 + $0x68] sm:$0xff]  ;;  %v284_v23 = vld [vmem:[%s1366_s19 + $0x70] sm:$0xff]  ;;  %p1037_p5 = scmp.ne.s32.totalorder %s1464_s20, %s1036_s8  ;;  %s1155_s28 = smov [#allocation9]  }
  0x81   : > { %766 = vmatprep.mubr.f32.mxu0 %v238_v9  ;;  %790 = vmatprep.mubr.f32.mxu1 %v254_v10  ;;  %v838_v22 = vpack.c.bf16 %v283_v21, %v282_v20  ;;  %v285_v24 = vld [vmem:[%s1366_s19 + $0x78] sm:$0xff]  ;;  %v239_v26 = vld [vmem:[#allocation4 + $0x8] sm:$0xff]  ;;  %v240_v28 = vld [vmem:[#allocation4 + $0x10] sm:$0xff]  ;;  %s286_s17 = scalar_lea.vmem %s1532_s3, %s237_s1  ;;  %s1040_s14 = sshll.u32 %s1155_s28, 4  ;;  %s1041_s14 = int_to_ptr.vmem [resolvable:$false] %s1040_s14 }
  0x82   : > { %v842_v25 = vpack.c.bf16 %v285_v24, %v284_v23  ;;  %v255_v27 = vld [vmem:[#allocation4 + $0x88] sm:$0xff]  ;;  %v256_v29 = vld [vmem:[#allocation4 + $0x90] sm:$0xff]  ;;  %v241_v30 = vld [vmem:[#allocation4 + $0x18] sm:$0xff]  ;;  %p1038_p10 = pnand %p1037_p5, %p1559_p6  ;;  %s1042_s18 = scalar_lea.vmem %s1041_s14, 8192 }
  0x83   : > { %821 = vmatpush3.bf16.msra.mxu0 %v818_v5  ;;  %855 = vmatpush3.bf16.msra.mxu1 %v818_v5  ;;  %v257_v31 = vld [vmem:[#allocation4 + $0x98] sm:$0xff]  ;;  %v242_v32 = vld [vmem:[#allocation4 + $0x20] sm:$0xff]  ;;  %v243_v34 = vld [vmem:[#allocation4 + $0x28] sm:$0xff]  ;;  %p1043_p0 = scmp.lt.s32.totalorder %s1464_s20, %s1041_s14  ;;  %p1044_p2 = scmp.lt.s32.totalorder %s1042_s18, %s1036_s8 }
  0x84   : > { %823 = vmatprep.subr.bf16.mxu0 %v822_v8  ;;  %848 = vmatprep.subr.bf16.mxu1 %v822_v8  ;;  %v258_v33 = vld [vmem:[#allocation4 + $0xa0] sm:$0xff]  ;;  %v259_v35 = vld [vmem:[#allocation4 + $0xa8] sm:$0xff]  ;;  %v244_v36 = vld [vmem:[#allocation4 + $0x30] sm:$0xff]  ;;  %p1039_p12 = pneg %p1038_p10 }
  0x85   : > { %v260_v37 = vld [vmem:[#allocation4 + $0xb0] sm:$0xff]  ;;  %v245_v38 = vld [vmem:[#allocation4 + $0x38] sm:$0xff]  ;;  %v246_v40 = vld [vmem:[#allocation4 + $0x40] sm:$0xff]  ;;  %p1045_p3 = por %p1044_p2, %p1043_p0 }
  0x86   : > { %v261_v39 = vld [vmem:[#allocation4 + $0xb8] sm:$0xff]  ;;  %v262_v41 = vld [vmem:[#allocation4 + $0xc0] sm:$0xff]  ;;  %v247_v42 = vld [vmem:[#allocation4 + $0x48] sm:$0xff] }
  0x87   : > { %825 = vmatpush3.bf16.msra.mxu0 %v822_v8  ;;  %856 = vmatpush3.bf16.msra.mxu1 %v822_v8  ;;  %v263_v43 = vld [vmem:[#allocation4 + $0xc8] sm:$0xff]  ;;  %v248_v44 = vld [vmem:[#allocation4 + $0x50] sm:$0xff]  ;;  %v249_v46 = vld [vmem:[#allocation4 + $0x58] sm:$0xff]  ;;  %p1046_p7 = pnand %p1045_p3, %p1039_p12 }
  0x88   : > { %827 = vmatprep.subr.bf16.mxu0 %v826_v13  ;;  %849 = vmatprep.subr.bf16.mxu1 %v826_v13  ;;  %v264_v45 = vld [vmem:[#allocation4 + $0xd0] sm:$0xff]  ;;  %v265_v47 = vld [vmem:[#allocation4 + $0xd8] sm:$0xff]  ;;  %v250_v48 = vld [vmem:[#allocation4 + $0x60] sm:$0xff] }
  0x89   : > { %v266_v49 = vld [vmem:[#allocation4 + $0xe0] sm:$0xff]  ;;  %v251_v50 = vld [vmem:[#allocation4 + $0x68] sm:$0xff]  ;;  %v252_v52 = vld [vmem:[#allocation4 + $0x70] sm:$0xff] }
  0x8a   : > { %v267_v51 = vld [vmem:[#allocation4 + $0xe8] sm:$0xff]  ;;  %v268_v53 = vld [vmem:[#allocation4 + $0xf0] sm:$0xff]  ;;  %v253_v54 = vld [vmem:[#allocation4 + $0x78] sm:$0xff] }
  0x8b   : > { %829 = vmatpush3.bf16.msra.mxu0 %v826_v13  ;;  %857 = vmatpush3.bf16.msra.mxu1 %v826_v13  ;;  %v269_v55 = vld [vmem:[#allocation4 + $0xf8] sm:$0xff] }
  0x8c   : > { %831 = vmatprep.subr.bf16.mxu0 %v830_v16  ;;  %850 = vmatprep.subr.bf16.mxu1 %v830_v16  ;;  %v1395_v56 = vld [vmem:[%s286_s17] ss:$0 sm:$0xff] }
  0x8f   : > { %833 = vmatpush3.bf16.msra.mxu0 %v830_v16  ;;  %858 = vmatpush3.bf16.msra.mxu1 %v830_v16 }
  0x90   : > { %835 = vmatprep.subr.bf16.mxu0 %v834_v19  ;;  %851 = vmatprep.subr.bf16.mxu1 %v834_v19 }
  0x93   : > { %837 = vmatpush3.bf16.msra.mxu0 %v834_v19  ;;  %859 = vmatpush3.bf16.msra.mxu1 %v834_v19 }
  0x94   : > { %839 = vmatprep.subr.bf16.mxu0 %v838_v22  ;;  %852 = vmatprep.subr.bf16.mxu1 %v838_v22 }
  0x97   : > { %841 = vmatpush3.bf16.msra.mxu0 %v838_v22  ;;  %860 = vmatpush3.bf16.msra.mxu1 %v838_v22 }
  0x98   : > { %843 = vmatprep.subr.bf16.mxu0 %v842_v25  ;;  %853 = vmatprep.subr.bf16.mxu1 %v842_v25 }
  0x9b   : > { %845 = vmatpush3.bf16.msra.mxu0 %v842_v25  ;;  %861 = vmatpush3.bf16.msra.mxu1 %v842_v25 }
  0x9e   : > { %767 = vmatmul.mubr.f32.vlgmr.msra.gmra.mrb[0].mxu0 %v239_v26  ;;  %791 = vmatmul.mubr.f32.vlgmr.msra.gmra.mrb[0].mxu1 %v255_v27 }
  0x9f   : > { %769 = vmatprep.mubr.f32.mxu0 %v240_v28  ;;  %793 = vmatprep.mubr.f32.mxu1 %v256_v29 }
  0xa2   : > { %770 = vmatmul.mubr.f32.gmra.mrb[2].mxu0 %v241_v30  ;;  %794 = vmatmul.mubr.f32.gmra.mrb[2].mxu1 %v257_v31 }
  0xa3   : > { %772 = vmatprep.mubr.f32.mxu0 %v242_v32  ;;  %796 = vmatprep.mubr.f32.mxu1 %v258_v33 }
  0xa6   : > { %773 = vmatmul.mubr.f32.gmra.mrb[4].mxu0 %v243_v34  ;;  %797 = vmatmul.mubr.f32.gmra.mrb[4].mxu1 %v259_v35 }
  0xa7   : > { %775 = vmatprep.mubr.f32.mxu0 %v244_v36  ;;  %799 = vmatprep.mubr.f32.mxu1 %v260_v37 }
  0xaa   : > { %776 = vmatmul.mubr.f32.gmra.mrb[6].mxu0 %v245_v38  ;;  %800 = vmatmul.mubr.f32.gmra.mrb[6].mxu1 %v261_v39 }
  0xab   : > { %778 = vmatprep.mubr.f32.mxu0 %v246_v40  ;;  %802 = vmatprep.mubr.f32.mxu1 %v262_v41 }
  0xae   : > { %779 = vmatmul.mubr.f32.gmra.mrb[8].mxu0 %v247_v42  ;;  %803 = vmatmul.mubr.f32.gmra.mrb[8].mxu1 %v263_v43 }
  0xaf   : > { %781 = vmatprep.mubr.f32.mxu0 %v248_v44  ;;  %805 = vmatprep.mubr.f32.mxu1 %v264_v45 }
  0xb2   : > { %782 = vmatmul.mubr.f32.gmra.mrb[10].mxu0 %v249_v46  ;;  %806 = vmatmul.mubr.f32.gmra.mrb[10].mxu1 %v265_v47 }
  0xb3   : > { %784 = vmatprep.mubr.f32.mxu0 %v250_v48  ;;  %808 = vmatprep.mubr.f32.mxu1 %v266_v49 }
  0xb6   : > { %785 = vmatmul.mubr.f32.gmra.mrb[12].mxu0 %v251_v50  ;;  %809 = vmatmul.mubr.f32.gmra.mrb[12].mxu1 %v267_v51 }
  0xb7   : > { %787 = vmatprep.mubr.f32.mxu0 %v252_v52  ;;  %811 = vmatprep.mubr.f32.mxu1 %v268_v53 }
  0xba   : > { %788 = vmatmul.mubr.f32.gmra.mrb[14].mxu0 %v253_v54  ;;  %812 = vmatmul.mubr.f32.gmra.mrb[14].mxu1 %v269_v55 }
 0x171   : > { %v768_v57 = vpop.f32.mrb[0].mxu0  ;;  %v792_v58 = vpop.f32.mrb[0].mxu1 }
 0x172   : > { %v366_v59 = vadd.f32 %v768_v57, %v1395_v56  ;;  %v446_v60 = vadd.f32 %v792_v58, %v1395_v56  ;;  %v360_v61 = vpop.f32.mrb[1].mxu0  ;;  %v440_v62 = vpop.f32.mrb[1].mxu1 }
 0x173   : > { %v361_v63 = vadd.f32 %v1395_v56, %v360_v61  ;;  %v441_v0 = vadd.f32 %v1395_v56, %v440_v62 }
 0x174   : > { %520 = vst [vmem:[%s1401_s16 + $0x8] sm:$0xff] %v366_v59  ;;  %536 = vst [vmem:[%s1401_s16 + $0x88] sm:$0xff] %v446_v60 }
 0x175   : > { %519 = vst [vmem:[%s1401_s16] sm:$0xff] %v361_v63  ;;  %535 = vst [vmem:[%s1401_s16 + $0x80] sm:$0xff] %v441_v0  ;;  %v771_v1 = vpop.f32.mrb[2].mxu0  ;;  %v795_v2 = vpop.f32.mrb[2].mxu1 }
 0x176   : > { %v376_v3 = vadd.f32 %v771_v1, %v1395_v56  ;;  %v456_v4 = vadd.f32 %v795_v2, %v1395_v56  ;;  %v370_v5 = vpop.f32.mrb[3].mxu0  ;;  %v450_v6 = vpop.f32.mrb[3].mxu1 }
 0x177   : > { %v371_v7 = vadd.f32 %v1395_v56, %v370_v5  ;;  %v451_v8 = vadd.f32 %v1395_v56, %v450_v6 }
 0x178   : > { %522 = vst [vmem:[%s1401_s16 + $0x18] sm:$0xff] %v376_v3  ;;  %538 = vst [vmem:[%s1401_s16 + $0x98] sm:$0xff] %v456_v4 }
 0x179   : > { %521 = vst [vmem:[%s1401_s16 + $0x10] sm:$0xff] %v371_v7  ;;  %537 = vst [vmem:[%s1401_s16 + $0x90] sm:$0xff] %v451_v8  ;;  %v774_v9 = vpop.f32.mrb[4].mxu0  ;;  %v798_v10 = vpop.f32.mrb[4].mxu1 }
 0x17a   : > { %v386_v11 = vadd.f32 %v774_v9, %v1395_v56  ;;  %v466_v12 = vadd.f32 %v798_v10, %v1395_v56  ;;  %v380_v13 = vpop.f32.mrb[5].mxu0  ;;  %v460_v14 = vpop.f32.mrb[5].mxu1 }
 0x17b   : > { %v381_v15 = vadd.f32 %v1395_v56, %v380_v13  ;;  %v461_v16 = vadd.f32 %v1395_v56, %v460_v14 }
 0x17c   : > { %524 = vst [vmem:[%s1401_s16 + $0x28] sm:$0xff] %v386_v11  ;;  %540 = vst [vmem:[%s1401_s16 + $0xa8] sm:$0xff] %v466_v12 }
 0x17d   : > { %523 = vst [vmem:[%s1401_s16 + $0x20] sm:$0xff] %v381_v15  ;;  %539 = vst [vmem:[%s1401_s16 + $0xa0] sm:$0xff] %v461_v16  ;;  %v777_v17 = vpop.f32.mrb[6].mxu0  ;;  %v801_v18 = vpop.f32.mrb[6].mxu1 }
 0x17e   : > { %v396_v19 = vadd.f32 %v777_v17, %v1395_v56  ;;  %v476_v20 = vadd.f32 %v801_v18, %v1395_v56  ;;  %v390_v21 = vpop.f32.mrb[7].mxu0  ;;  %v470_v22 = vpop.f32.mrb[7].mxu1 }
 0x17f   : > { %v391_v23 = vadd.f32 %v1395_v56, %v390_v21  ;;  %v471_v24 = vadd.f32 %v1395_v56, %v470_v22 }
 0x180   : > { %526 = vst [vmem:[%s1401_s16 + $0x38] sm:$0xff] %v396_v19  ;;  %542 = vst [vmem:[%s1401_s16 + $0xb8] sm:$0xff] %v476_v20 }
 0x181   : > { %525 = vst [vmem:[%s1401_s16 + $0x30] sm:$0xff] %v391_v23  ;;  %541 = vst [vmem:[%s1401_s16 + $0xb0] sm:$0xff] %v471_v24  ;;  %v780_v25 = vpop.f32.mrb[8].mxu0  ;;  %v804_v26 = vpop.f32.mrb[8].mxu1 }
 0x182   : > { %v406_v27 = vadd.f32 %v780_v25, %v1395_v56  ;;  %v486_v28 = vadd.f32 %v804_v26, %v1395_v56  ;;  %v400_v29 = vpop.f32.mrb[9].mxu0  ;;  %v480_v30 = vpop.f32.mrb[9].mxu1 }
 0x183   : > { %v401_v31 = vadd.f32 %v1395_v56, %v400_v29  ;;  %v481_v32 = vadd.f32 %v1395_v56, %v480_v30 }
 0x184   : > { %528 = vst [vmem:[%s1401_s16 + $0x48] sm:$0xff] %v406_v27  ;;  %544 = vst [vmem:[%s1401_s16 + $0xc8] sm:$0xff] %v486_v28 }
 0x185   : > { %527 = vst [vmem:[%s1401_s16 + $0x40] sm:$0xff] %v401_v31  ;;  %543 = vst [vmem:[%s1401_s16 + $0xc0] sm:$0xff] %v481_v32  ;;  %v783_v33 = vpop.f32.mrb[10].mxu0  ;;  %v807_v34 = vpop.f32.mrb[10].mxu1 }
 0x186   : > { %v416_v35 = vadd.f32 %v783_v33, %v1395_v56  ;;  %v496_v36 = vadd.f32 %v807_v34, %v1395_v56  ;;  %v410_v37 = vpop.f32.mrb[11].mxu0  ;;  %v490_v38 = vpop.f32.mrb[11].mxu1 }
 0x187   : > { %v411_v39 = vadd.f32 %v1395_v56, %v410_v37  ;;  %v491_v40 = vadd.f32 %v1395_v56, %v490_v38 }
 0x188   : > { %530 = vst [vmem:[%s1401_s16 + $0x58] sm:$0xff] %v416_v35  ;;  %546 = vst [vmem:[%s1401_s16 + $0xd8] sm:$0xff] %v496_v36 }
 0x189   : > { %529 = vst [vmem:[%s1401_s16 + $0x50] sm:$0xff] %v411_v39  ;;  %545 = vst [vmem:[%s1401_s16 + $0xd0] sm:$0xff] %v491_v40  ;;  %v786_v41 = vpop.f32.mrb[12].mxu0  ;;  %v810_v42 = vpop.f32.mrb[12].mxu1 }
 0x18a   : > { %v426_v43 = vadd.f32 %v786_v41, %v1395_v56  ;;  %v506_v44 = vadd.f32 %v810_v42, %v1395_v56  ;;  %v420_v45 = vpop.f32.mrb[13].mxu0  ;;  %v500_v46 = vpop.f32.mrb[13].mxu1 }
 0x18b   : > { %v421_v47 = vadd.f32 %v1395_v56, %v420_v45  ;;  %v501_v48 = vadd.f32 %v1395_v56, %v500_v46 }
 0x18c   : > { %532 = vst [vmem:[%s1401_s16 + $0x68] sm:$0xff] %v426_v43  ;;  %548 = vst [vmem:[%s1401_s16 + $0xe8] sm:$0xff] %v506_v44 }
 0x18d   : > { %531 = vst [vmem:[%s1401_s16 + $0x60] sm:$0xff] %v421_v47  ;;  %547 = vst [vmem:[%s1401_s16 + $0xe0] sm:$0xff] %v501_v48  ;;  %v789_v49 = vpop.f32.mrb[14].mxu0  ;;  %v813_v50 = vpop.f32.mrb[14].mxu1 }
 0x18e   : > { %v436_v51 = vadd.f32 %v789_v49, %v1395_v56  ;;  %v516_v52 = vadd.f32 %v813_v50, %v1395_v56  ;;  %v430_v53 = vpop.f32.mrb[15].mxu0  ;;  %v510_v54 = vpop.f32.mrb[15].mxu1 }
 0x18f   : > { %v431_v55 = vadd.f32 %v1395_v56, %v430_v53  ;;  %v511_v57 = vadd.f32 %v1395_v56, %v510_v54 }
 0x190   : > { %534 = vst [vmem:[%s1401_s16 + $0x78] sm:$0xff] %v436_v51  ;;  %550 = vst [vmem:[%s1401_s16 + $0xf8] sm:$0xff] %v516_v52 }
 0x191   : > { %533 = vst [vmem:[%s1401_s16 + $0x70] sm:$0xff] %v431_v55  ;;  %549 = vst [vmem:[%s1401_s16 + $0xf0] sm:$0xff] %v511_v57 }
 0x192   : > { %1049 = shalt.err (!%p1046_p7)
}
 0x193   : > { %s1050_s19 = scalar_lea.hbm %s1462_s15, 4096  ;;  %s1054_s10 = scalar_lea.hbm %s1533_s4, 28672 }
 0x194   : > { %p1051_p9 = scmp.ne.s32.totalorder %s1462_s15, %s1050_s19  ;;  %p1055_p8 = scmp.lt.u32.totalorder %s1462_s15, %s1533_s4 }
 0x195   : > { %p1056_p11 = scmp.lt.u32.totalorder %s1054_s10, %s1050_s19  ;;  %p1058_p5 = scmp.lt.u32.totalorder %s1050_s19, %s1462_s15 }
 0x196   : > { %p1052_p13 = pnand %p1051_p9, %p1559_p6 }
 0x197   : > { %p1057_p4 = por %p1056_p11, %p1055_p8 }
 0x198   : > { %p1053_p1 = pneg %p1052_p13 }
 0x199   : > { %p1059_p10 = por %p1058_p5, %p1057_p4 }
 0x19b   : > { %p1060_p12 = pnand %p1059_p10, %p1053_p1 }
 0x19d   : > { %1063 = shalt.err (!%p1060_p12)
}
 0x19e   : > { %s1156_s24 = smov 128   ;;  %s1157_s16 = smov 8  }
 0x19f   : > { %870 = dma.vmem_to_hbm [thread:$0]  (%p1559_p6), %s1464_s20, 4096, %s1462_s15, %s1474_s5, %s1156_s24, %s1156_s24, %s1157_s16  }
 0x1a0 PF: > { %p889_p0 = scmp.ge.s32.totalorder %s1148_s6, 2  ;;  %s582_s22 = sand.u32 1, %s1116_s25  }
 0x1a1   : > { %p1560_p2 = scmp.ne.s32.totalorder %s1548_s12, 0  ;;  %s583_s0 = scalar_lea.sflag [#allocation6], %s582_s22 }
 0x1a3   : > { %p883_p3 = pnand %p889_p0, %p1560_p2 }
 0x1a5   : > { %1111 = dma.done.wait (!%p883_p3), %s583_s0, 4096  }
 0x1a6   : > { %1113 = vsyncadd (!%p883_p3), %s583_s0, 4294963200  ;;  %s25_s6 = sadd.s32 1, %s1148_s6   ;;  %s1561_s0 = sld [smem:[#allocation16_spill]] }
 0x1a7   : > { %p22_p7 = scmp.ge.s32.totalorder %s25_s6, 9   ;;  %s1562_s5 = sld [smem:[#allocation17_spill]] }
 0x1a8   : > { %s1563_s25 = smov %s1120_s26  ;;  %s1564_s26 = smov %s1124_s27 }
 0x1a9   : > { %s1565_s27 = smov %s1309_s23  ;;  %s1566_s28 = smov %s1132_s29 }
 0x1aa   : > { %s1567_s29 = smov %s1136_s30  ;;  %s1568_s30 = smov %s1318_s7 }
 0x1ab   :  { %24 = sbr.rel (!%p22_p7) target bundleno = 21 (0x15), region = 84 }
 0x1b2   :  { %588 = vsyncpa [#allocation5], 1 }
 0x1b3   :  { %590 = vsyncpa [#allocation5 + $0x1], 1 }
 0x1b4   :  { %591 = vsyncpa [#allocation8], 1 }
 0x1b5   :  { %593 = vsyncpa [#allocation8 + $0x1], 1 }
 0x1b6   :  { %594 = vsyncpa [#allocation6], 1 }
 0x1b7   :  { %596 = vsyncpa [#allocation6 + $0x1], 1 }

</bundles_post_ra>
